<compile_context>
chip_gen: v6e
topology: v6e:2x2x1
jax: 0.10.0
libtpu: 0.0.40
codegen_flags: <defaults>
</compile_context>

<pallas_src>
import functools

import jax
import jax.numpy as jnp
from jax.experimental import pallas as pl
from jax.experimental.pallas import tpu as pltpu

LANE = 128
SUBLANE = 8


def _round_up(x, m):
    return ((x + m - 1) // m) * m


def _pad2d(x, rows, cols):
    return jnp.pad(x, ((0, rows - x.shape[0]), (0, cols - x.shape[1])))


# ----------------------------- Pallas kernel ---------------------------------
def _gcn2_fused_kernel(a_ref, h_ref, w1_ref, w2_ref, b_ref, o_ref):
    """Fused 2-layer GCN: out = A_hat @ relu((A_hat @ h) @ W1 + b1) @ W2 + b2.

    a_ref:  (Np, Np)   bf16, pre-normalized adjacency D^-1/2 A D^-1/2
    h_ref:  (Np, Fin)  bf16 node features
    w1_ref: (Fin, HIDp)  bf16   w2_ref: (HIDp, NCLSp) bf16
    b_ref:  (2, BPAD)  f32, row 0 = b1 (padded), row 1 = b2 (padded)
    o_ref:  (Np, NCLSp) f32
    """
    hid_p = w1_ref.shape[1]
    ncls_p = w2_ref.shape[1]
    b1 = b_ref[0:1, :hid_p]                   # (1, HIDp)  f32
    b2 = b_ref[1:2, :ncls_p]                  # (1, NCLSp) f32

    a = a_ref[...]                            # (Np, Np) bf16, reused by both layers

    # ---- layer 1: contract A at lane width Fin, then expand with W1 (MXU bf16,
    #      f32 accumulation; bias+relu on the f32 accumulator).
    t = jnp.dot(a, h_ref[...], preferred_element_type=jnp.float32)        # (Np, Fin)
    h1 = jnp.dot(t.astype(jnp.bfloat16), w1_ref[...],
                 preferred_element_type=jnp.float32)                      # (Np, HIDp)
    h1 = jnp.maximum(h1 + b1, 0.0)
    # F.dropout(h, p, training=False) is the identity in eval mode.
    # TODO(synk): training-mode dropout via pltpu.prng_seed + pltpu.prng_random_bits.

    # ---- layer 2: A_hat @ (h1 @ W2) so the NxN contraction runs at the narrow
    #      (lane-dense) class width.
    z = jnp.dot(h1.astype(jnp.bfloat16), w2_ref[...],
                preferred_element_type=jnp.float32)                       # (Np, NCLSp)
    out = jnp.dot(a, z.astype(jnp.bfloat16),
                  preferred_element_type=jnp.float32) + b2
    o_ref[...] = out.astype(o_ref.dtype)


# --------------------- one-time setup (hoisted per review) -------------------
def prepare_gcn(adj, norm, h, params):
    """Runs ONCE at graph/param setup, NOT per forward call.

    Folds normalization into A_hat, lane-pads weights, packs biases, casts the
    big operands to bf16, and pads the node axis to a sublane multiple.
    """
    w1, b1, w2, b2 = params
    n, fin = h.shape
    hid, ncls = w1.shape[1], w2.shape[1]

    n_p = _round_up(n, SUBLANE)
    hid_p = _round_up(hid, LANE)
    ncls_p = _round_up(ncls, LANE)
    bpad = max(hid_p, ncls_p)

    # Symmetric normalization folded into the adjacency (exact rewrite).
    a_hat = (norm * adj * norm.T).astype(jnp.float32)
    a_hat = _pad2d(a_hat, n_p, n_p).astype(jnp.bfloat16)           # (Np, Np)   bf16
    h_p = _pad2d(h, n_p, fin).astype(jnp.bfloat16)                 # (Np, Fin)  bf16

    # Zero-padded weights keep padded lanes exactly zero through relu(0+0)=0.
    w1_p = _pad2d(w1, fin, hid_p).astype(jnp.bfloat16)             # (Fin, HIDp)
    w2_p = _pad2d(w2, hid_p, ncls_p).astype(jnp.bfloat16)          # (HIDp, NCLSp)

    # Both biases packed into a single small f32 buffer (one DMA instead of two).
    b_packed = jnp.zeros((2, bpad), jnp.float32)
    b_packed = b_packed.at[0, :hid].set(b1).at[1, :ncls].set(b2)

    prepared = (a_hat, h_p, w1_p, w2_p, b_packed)
    return prepared, (n, ncls)


def make_gcn_forward(n, ncls):
    """Builds the jitted forward; the per-call path is just pallas_call + slice."""

    @jax.jit
    def forward(a_hat, h_p, w1_p, w2_p, b_packed):
        n_p = a_hat.shape[0]
        ncls_p = w2_p.shape[1]
        out_p = pl.pallas_call(
            _gcn2_fused_kernel,
            out_shape=jax.ShapeDtypeStruct((n_p, ncls_p), jnp.float32),
            in_specs=[
                pl.BlockSpec(memory_space=pltpu.MemorySpace.VMEM),  # a_hat
                pl.BlockSpec(memory_space=pltpu.MemorySpace.VMEM),  # h
                pl.BlockSpec(memory_space=pltpu.MemorySpace.VMEM),  # w1
                pl.BlockSpec(memory_space=pltpu.MemorySpace.VMEM),  # w2
                pl.BlockSpec(memory_space=pltpu.MemorySpace.VMEM),  # packed biases
            ],
            out_specs=pl.BlockSpec(memory_space=pltpu.MemorySpace.VMEM),
            compiler_params=pltpu.CompilerParams(
                # Explicit, generation-safe scoped-VMEM ceiling (fits v5e default
                # physical and v7x's 64 MiB with plenty of headroom at these shapes).
                vmem_limit_bytes=32 * 1024 * 1024,
            ),
        )(a_hat, h_p, w1_p, w2_p, b_packed)
        return out_p[:n, :ncls]

    return forward


# ------------------------------ references -----------------------------------
def xavier_uniform(key, shape):
    fan_in, fan_out = shape
    bound = jnp.sqrt(6.0 / (fan_in + fan_out))
    return jax.random.uniform(key, shape, jnp.float32, minval=-bound, maxval=bound)


def reference_forward(adj, norm, h, params):
    """Pure-JAX f32 reference following the original (unfolded) module math."""
    w1, b1, w2, b2 = params

    def layer(x, w, b):
        x = x * norm
        x = adj @ x
        x = x * norm
        return x @ w + b

    h1 = jnp.maximum(layer(h, w1, b1), 0.0)
    return layer(h1, w2, b2)


def reference_forward_bf16(adj, norm, h, params):
    """Same math/quantization points as the kernel (bf16 operands, f32 accum)."""
    w1, b1, w2, b2 = params
    bf = jnp.bfloat16
    a = (norm * adj * norm.T).astype(bf)
    t = jnp.dot(a, h.astype(bf), preferred_element_type=jnp.float32)
    h1 = jnp.maximum(
        jnp.dot(t.astype(bf), w1.astype(bf), preferred_element_type=jnp.float32) + b1, 0.0)
    z = jnp.dot(h1.astype(bf), w2.astype(bf), preferred_element_type=jnp.float32)
    return jnp.dot(a, z.astype(bf), preferred_element_type=jnp.float32) + b2


# --------------------------------- main ---------------------------------------
if __name__ == "__main__":
    # Small shapes: N=16 nodes, in_features=8, hidden=32, n_classes=4.
    N, IN_F, HID, NCLS = 16, 8, 32, 4

    key = jax.random.PRNGKey(0)
    k_adj, k_h, k_w1, k_w2 = jax.random.split(key, 4)

    # Deterministic synthetic undirected graph with self-loops (dense adjacency).
    a_rand = jax.random.uniform(k_adj, (N, N), jnp.float32)
    adj = ((a_rand + a_rand.T) > 1.2).astype(jnp.float32)
    adj = jnp.maximum(adj, jnp.eye(N, dtype=jnp.float32))      # self loops -> degree >= 1

    # GCN symmetric normalization: norm = deg^{-1/2}, shape (N, 1).
    deg = jnp.sum(adj, axis=1, keepdims=True)
    norm = 1.0 / jnp.sqrt(deg)

    # Node features.
    h = jax.random.normal(k_h, (N, IN_F), jnp.float32)

    # Parameters (xavier_uniform weights, bias = 0.001), matching GCNLayer.__init__.
    w1 = xavier_uniform(k_w1, (IN_F, HID))
    b1 = jnp.full((HID,), 0.001, jnp.float32)
    w2 = xavier_uniform(k_w2, (HID, NCLS))
    b2 = jnp.full((NCLS,), 0.001, jnp.float32)
    params = (w1, b1, w2, b2)

    # One-time setup (normalization fold, padding, bf16 cast, bias packing).
    prepared, (n_nodes, n_classes) = prepare_gcn(adj, norm, h, params)
    prepared = jax.block_until_ready(prepared)

    # Per-call forward = pallas_call + slice only.
    fwd = make_gcn_forward(n_nodes, n_classes)
    out = jax.block_until_ready(fwd(*prepared))

    assert out.shape == (N, NCLS)

    # Tight check vs a reference using the kernel's exact quantization points.
    ref_q = reference_forward_bf16(adj, norm, h, params)
    assert jnp.allclose(out, ref_q, atol=1e-4, rtol=1e-4), "mismatch vs bf16-path reference"

    # Module-semantics (full f32) check, with tolerance for bf16 operand storage.
    ref = reference_forward(adj, norm, h, params)
    assert jnp.allclose(out, ref, atol=3e-2, rtol=3e-2), "mismatch vs f32 module reference"

    print("KERNEL_OK")
</pallas_src>

<mosaic_0001>
module attributes {stable_mosaic.version = 11 : i64} {
  func.func @_gcn2_fused_kernel(%arg0: memref<16x16xbf16, #tpu.memory_space<vmem>>, %arg1: memref<16x8xbf16, #tpu.memory_space<vmem>>, %arg2: memref<8x128xbf16, #tpu.memory_space<vmem>>, %arg3: memref<128x128xbf16, #tpu.memory_space<vmem>>, %arg4: memref<2x128xf32, #tpu.memory_space<vmem>>, %arg5: memref<16x128xf32, #tpu.memory_space<vmem>>) attributes {dimension_semantics = [], scalar_prefetch = 0 : i64, scratch_operands = 0 : i64, tpu.core_type = #tpu.core_type<tc>} {
    %c0 = arith.constant 0 : index
    %c0_0 = arith.constant 0 : index
    %0 = vector.load %arg4[%c0, %c0_0] : memref<2x128xf32, #tpu.memory_space<vmem>>, vector<1x128xf32>
    %c1 = arith.constant 1 : index
    %c0_1 = arith.constant 0 : index
    %1 = vector.load %arg4[%c1, %c0_1] : memref<2x128xf32, #tpu.memory_space<vmem>>, vector<1x128xf32>
    %c0_2 = arith.constant 0 : index
    %c0_3 = arith.constant 0 : index
    %2 = vector.load %arg0[%c0_2, %c0_3] : memref<16x16xbf16, #tpu.memory_space<vmem>>, vector<16x16xbf16>
    %c0_4 = arith.constant 0 : index
    %c0_5 = arith.constant 0 : index
    %3 = vector.load %arg1[%c0_4, %c0_5] : memref<16x8xbf16, #tpu.memory_space<vmem>>, vector<16x8xbf16>
    %cst = arith.constant dense<0.000000e+00> : vector<16x8xf32>
    %4 = tpu.matmul %2, %3, %cst {dimension_numbers = #tpu.dot_dimension_numbers<[1], [0], [0], [1], [0, 0, 1, 1], [], []>} : vector<16x16xbf16>, vector<16x8xbf16>, vector<16x8xf32> -> vector<16x8xf32>
    %5 = arith.truncf %4 : vector<16x8xf32> to vector<16x8xbf16>
    %c0_6 = arith.constant 0 : index
    %c0_7 = arith.constant 0 : index
    %6 = vector.load %arg2[%c0_6, %c0_7] : memref<8x128xbf16, #tpu.memory_space<vmem>>, vector<8x128xbf16>
    %cst_8 = arith.constant dense<0.000000e+00> : vector<16x128xf32>
    %7 = tpu.matmul %5, %6, %cst_8 {dimension_numbers = #tpu.dot_dimension_numbers<[1], [0], [0], [1], [0, 0, 1, 1], [], []>} : vector<16x8xbf16>, vector<8x128xbf16>, vector<16x128xf32> -> vector<16x128xf32>
    %8 = vector.broadcast %0 : vector<1x128xf32> to vector<16x128xf32>
    %9 = arith.addf %7, %8 : vector<16x128xf32>
    %cst_9 = arith.constant 0.000000e+00 : f32
    %10 = vector.broadcast %cst_9 : f32 to vector<16x128xf32>
    %11 = arith.maximumf %9, %10 : vector<16x128xf32>
    %12 = arith.truncf %11 : vector<16x128xf32> to vector<16x128xbf16>
    %c0_10 = arith.constant 0 : index
    %c0_11 = arith.constant 0 : index
    %13 = vector.load %arg3[%c0_10, %c0_11] : memref<128x128xbf16, #tpu.memory_space<vmem>>, vector<128x128xbf16>
    %cst_12 = arith.constant dense<0.000000e+00> : vector<16x128xf32>
    %14 = tpu.matmul %12, %13, %cst_12 {dimension_numbers = #tpu.dot_dimension_numbers<[1], [0], [0], [1], [0, 0, 1, 1], [], []>} : vector<16x128xbf16>, vector<128x128xbf16>, vector<16x128xf32> -> vector<16x128xf32>
    %15 = arith.truncf %14 : vector<16x128xf32> to vector<16x128xbf16>
    %cst_13 = arith.constant dense<0.000000e+00> : vector<16x128xf32>
    %16 = tpu.matmul %2, %15, %cst_13 {dimension_numbers = #tpu.dot_dimension_numbers<[1], [0], [0], [1], [0, 0, 1, 1], [], []>} : vector<16x16xbf16>, vector<16x128xbf16>, vector<16x128xf32> -> vector<16x128xf32>
    %17 = vector.broadcast %1 : vector<1x128xf32> to vector<16x128xf32>
    %18 = arith.addf %16, %17 : vector<16x128xf32>
    %c0_14 = arith.constant 0 : index
    %c0_15 = arith.constant 0 : index
    %19 = vector.load %arg5[%c0_14, %c0_15] : memref<16x128xf32, #tpu.memory_space<vmem>>, vector<16x128xf32>
    tpu.vector_store %arg5[%c0_14, %c0_15], %18 {strides = array<i32>} : memref<16x128xf32, #tpu.memory_space<vmem>>, vector<16x128xf32>,
    return
  }
}

</mosaic_0001>

<bundles_post_ra>
// kernel: forward.1
= control target key start
LH: loop header
LB: loop body
LE: loop exit
PB: predicated region body
PF: predicated region fallthrough
CT: control target
= control target key end

     0   :  { %10 = vsyncpa [#allocation3], 0  ;;  %s418_s18 = smov [#allocation2]   ;;  %s483_s0 = inlined_call_operand.vmem [shape: bf16[16,16], index: 0, kind: input, shape index: {}]   ;;  %s484_s1 = inlined_call_operand.vmem [shape: bf16[16,8], index: 1, kind: input, shape index: {}]   ;;  %s485_s2 = inlined_call_operand.vmem [shape: bf16[8,128], index: 2, kind: input, shape index: {}]   ;;  %s486_s3 = inlined_call_operand.hbm [shape: bf16[128,128], index: 3, kind: input, shape index: {}]   ;;  %s487_s4 = inlined_call_operand.vmem [shape: f32[2,128], index: 4, kind: input, shape index: {}]   ;;  %s488_s5 = inlined_call_operand.vmem [shape: f32[16,128], index: 5, kind: output, shape index: {}]  }
   0x1   :  { %s22_s19 = sshll.u32 %s418_s18, 4  ;;  %s23_s19 = int_to_ptr.vmem [resolvable:$true] %s22_s19 }
   0x2   :  { %s404_s20 = scalar_lea.vmem %s23_s19, 1024  ;;  %p409_p1 = scmp.lt.s32.totalorder %s23_s19, %s23_s19 }
   0x3   :  { %p405_p0 = scmp.ne.s32.totalorder %s23_s19, %s404_s20  ;;  %p410_p2 = scmp.lt.s32.totalorder %s404_s20, %s404_s20 }
   0x5   :  { %p411_p3 = por %p410_p2, %p409_p1 }
   0x7   :  { %p412_p4 = pnand %p411_p3, %p405_p0 }
   0x9   :  { %415 = shalt.err (!%p412_p4)
}
   0xa   :  { %s419_s21 = smov 64   ;;  %s420_s22 = smov 4  }
   0xb   :  { %28 = dma.hbm_to_vmem [thread:$0]  %s486_s3, 1024, %s23_s19, [#allocation3], %s419_s21, %s419_s21, %s420_s22  }
   0xc   :  { %416 = dma.done.wait [#allocation3], 1024  }
   0xd   :  { %417 = vsyncadd [#allocation3], 4294966272  ;;  %v421_v0 = vmov 0.0   ;;  %vm422_vm0 = vmmov 0   ;;  %v386_v1 = vld [vmem:[%s484_s1] sm:$0xff]   ;;  %vm52_vm1 = vcmask 130048  }
   0xe   :  { %343 = vmatprep.subr.bf16.mxu1 %v421_v0  ;;  %345 = vmatprep.mubr.msk.bf16.mxu1 %vm422_vm0, %v421_v0  ;;  %v387_v2 = vld [vmem:[%s483_s0] sm:$0xff]   ;;  %vm107_vm2 = vcmask 1043456   ;;  %v388_v5 = vld [vmem:[#allocation2 + $0x38] sm:$0xff]   ;;  %v389_v6 = vld [vmem:[#allocation2 + $0x30] sm:$0xff]   ;;  %vm103_vm3 = vcmask 64512  }
   0xf   :  { %355 = vmatprep.subr.bf16.mxu0 %v421_v0  ;;  %371 = vmatprep.mubr.msk.bf16.mxu0 %vm422_vm0, %v421_v0  ;;  %v98_v3 = vld [vmem:[%s485_s2] sm:$0xf]  ;;  %v390_v7 = vld [vmem:[#allocation2 + $0x28] sm:$0xff]   ;;  %v392_v9 = vld [vmem:[#allocation2 + $0x18] sm:$0xff]  }
  0x10   :  { %344 = vmatpush3.bf16.msra.mxu1 %v386_v1  ;;  %v109_v4 = vsel %vm107_vm2, %v98_v3, 0  ;;  %356 = vmatpush3.bf16.msra.mxu0 %v388_v5  ;;  %v391_v8 = vld [vmem:[#allocation2 + $0x20] sm:$0xff]   ;;  %v393_v15 = vld [vmem:[#allocation2 + $0x10] sm:$0xff]   ;;  %v394_v16 = vld [vmem:[#allocation2 + $0x8] sm:$0xff]  }
  0x11   :  { %349 = vmatprep.subr.bf16.mxu1 %v421_v0  ;;  %357 = vmatprep.subr.bf16.mxu0 %v421_v0  ;;  %v395_v17 = vld [vmem:[#allocation2] sm:$0xff]  }
  0x12   :  { %v316_v18 = vld [vmem:[%s487_s4] ss:$0 sm:$0xff]  ;;  %v326_v33 = vld [vmem:[%s487_s4 + $0x1] ss:$0 sm:$0xff] }
  0x13   :  { %346 = vmatmul.mubr.msk.bf16.vlgmr.msra.gmra.mxu1 %vm52_vm1, %v387_v2 }
  0x14   :  { %351 = vmatprep.mubr.msk.bf16.mxu1 %vm422_vm0, %v421_v0  ;;  %350 = vmatpush3.bf16.msra.mxu1 %v109_v4 }
  0x15   :  { %375 = vmatprep.subr.bf16.mxu1 %v421_v0  ;;  %358 = vmatpush3.bf16.msra.mxu0 %v389_v6 }
  0x16   :  { %359 = vmatprep.subr.bf16.mxu0 %v421_v0 }
  0x19   :  { %360 = vmatpush3.bf16.msra.mxu0 %v390_v7 }
  0x1a   :  { %361 = vmatprep.subr.bf16.mxu0 %v421_v0 }
  0x1d   :  { %362 = vmatpush3.bf16.msra.mxu0 %v391_v8 }
  0x1e   :  { %363 = vmatprep.subr.bf16.mxu0 %v421_v0 }
  0x21   :  { %364 = vmatpush3.bf16.msra.mxu0 %v392_v9 }
  0x22   :  { %365 = vmatprep.subr.bf16.mxu0 %v421_v0 }
  0x25   :  { %366 = vmatpush3.bf16.msra.mxu0 %v393_v15 }
  0x26   :  { %367 = vmatprep.subr.bf16.mxu0 %v421_v0 }
  0x29   :  { %368 = vmatpush3.bf16.msra.mxu0 %v394_v16 }
  0x2a   :  { %369 = vmatprep.subr.bf16.mxu0 %v421_v0 }
  0x2d   :  { %370 = vmatpush3.bf16.msra.mxu0 %v395_v17 }
  0xd3   :  { %v90_v10 = vpop.f32.mrf.mxu1 }
  0xd5   :  { %v347_v11 = vpop.f32.mrf.mxu1 }
  0xd7   :  { %v93_v12 = vpop.f32.mrf.mxu1 }
  0xd8   :  { %v97_v13 = vpack.c.bf16 %v93_v12, %v90_v10 }
  0xd9   :  { %v348_v14 = vpop.f32.mrf.mxu1 }
  0xda   :  { %352 = vmatmul.mubr.msk.bf16.vlgmr.msra.gmra.mxu1 %vm103_vm3, %v97_v13 }
  0xdb   :  { %377 = vmatprep.mubr.msk.bf16.mxu1 %vm422_vm0, %v421_v0 }
 0x19a   :  { %v145_v19 = vpop.f32.mrf.mxu1 }
 0x19b   :  { %v146_v21 = vadd.f32 %v316_v18, %v145_v19 }
 0x19c   :  { %v353_v20 = vpop.f32.mrf.mxu1 }
 0x19d   :  { %v152_v25 = vmax.f32 %v146_v21, 0.0 }
 0x19e   :  { %v148_v22 = vpop.f32.mrf.mxu1 }
 0x19f   :  { %v149_v23 = vadd.f32 %v316_v18, %v148_v22 }
 0x1a0   :  { %v354_v24 = vpop.f32.mrf.mxu1 }
 0x1a1   :  { %v153_v26 = vmax.f32 %v149_v23, 0.0 }
 0x1a3   :  { %v154_v27 = vpack.c.bf16 %v153_v26, %v152_v25 }
 0x1a5   :  { %372 = vmatmul.mubr.bf16.vlgmr.msra.gmra.mxu0 %v154_v27 }
 0x265   :  { %v253_v28 = vpop.f32.mrf.mxu0 }
 0x267   :  { %v373_v29 = vpop.f32.mrf.mxu0 }
 0x269   :  { %v256_v30 = vpop.f32.mrf.mxu0 }
 0x26a   :  { %v260_v31 = vpack.c.bf16 %v256_v30, %v253_v28 }
 0x26b   :  { %v374_v32 = vpop.f32.mrf.mxu0 }
 0x26c   :  { %376 = vmatpush3.bf16.msra.mxu1 %v260_v31 }
 0x26f   :  { %378 = vmatmul.mubr.msk.bf16.vlgmr.msra.gmra.mxu1 %vm52_vm1, %v387_v2 }
 0x32f   :  { %v299_v34 = vpop.f32.mrf.mxu1 }
 0x330   :  { %v300_v35 = vadd.f32 %v326_v33, %v299_v34 }
 0x331   :  { %v379_v36 = vpop.f32.mrf.mxu1 }
 0x332   :  { %306 = vst [vmem:[%s488_s5] sm:$0xff] %v300_v35 }
 0x333   :  { %v302_v37 = vpop.f32.mrf.mxu1 }
 0x334   :  { %v303_v38 = vadd.f32 %v326_v33, %v302_v37 }
 0x335   :  { %v380_v39 = vpop.f32.mrf.mxu1 }
 0x336   :  { %307 = vst [vmem:[%s488_s5 + $0x8] sm:$0xff] %v303_v38 }
 0x337   :  { %312 = vsyncpa [#allocation3], 1 }

</bundles_post_ra>
